<compile_context>
chip_gen: v7x
topology: tpu7x:2x2x1
jax: 0.10.0
libtpu: 0.0.40
codegen_flags: <defaults>
</compile_context>

<pallas_src>
import functools

import jax
import jax.numpy as jnp
from jax.experimental import pallas as pl
from jax.experimental.pallas import tpu as pltpu


def _round_up(n, m):
    return (n + m - 1) // m * m


def _round_down(n, m):
    return n // m * m


def _row_tile(R, max_rows):
    """Row (sublane) tile: multiple of 8, <= round_down(R, 8); >= 2 tiles if R >= 16."""
    if R <= 8:
        return R                                   # single block == full row extent
    r_cap = _round_down(R, 8)
    tr = max(8, min(_round_down(max_rows, 8), r_cap))
    if R >= 16:                                    # v7x megacore: keep >= 2 row tiles
        tr = min(tr, max(8, _round_up((R + 1) // 2, 8)))
    return max(8, min(tr, r_cap))


def _choose_tiles(R, S, itemsize, tile_budget_bytes):
    """Pick (TR, TS) targeting ~tile_budget_bytes per input block."""
    if 8 * S * itemsize <= tile_budget_bytes:
        # Whole spatial extent fits in the lane axis with at least 8 rows.
        TS = S
        TR = _row_tile(R, tile_budget_bytes // (S * itemsize))
    else:
        # Large feature map: minimum row tile, spend the budget on the lane axis.
        TR = _row_tile(R, 8)
        ts_cap = _round_down(tile_budget_bytes // (TR * itemsize), 128)
        TS = S if ts_cap >= S else max(128, ts_cap)
    return TR, TS


def _lse_pool_kernel(x_ref, r_ref, o_ref, m_sc, l_sc, *, S, TS, inv_s):
    """Grid step (i, k): row tile i (one (batch, channel) pair per row), spatial chunk k.

    Online LSE: m_sc holds the running per-row max, l_sc the running
    sum(exp(r * (x - m))) rescaled to the current max (flash-attention style).
    """
    k = pl.program_id(1)

    @pl.when(k == 0)
    def _init():
        m_sc[...] = jnp.full_like(m_sc, -jnp.inf)
        l_sc[...] = jnp.zeros_like(l_sc)

    x = x_ref[...].astype(jnp.float32)             # (TR, TS), upcast in-kernel
    r = r_ref[0]                                   # learnable scalar from SMEM

    need_mask = (S % TS) != 0                      # static (Python) condition
    if need_mask:
        # Ragged last spatial chunk: lanes >= S hold unspecified data.
        lane = jax.lax.broadcasted_iota(jnp.int32, x.shape, 1)
        valid = (k * TS + lane) < S
        x_for_max = jnp.where(valid, x, -jnp.inf)
    else:
        valid = None
        x_for_max = x

    m_prev = m_sc[...]                             # (TR, 1)
    m_new = jnp.maximum(m_prev, jnp.max(x_for_max, axis=-1, keepdims=True))

    t = r * (x - m_new)
    if need_mask:
        t = jnp.where(valid, t, -jnp.inf)          # masked lanes -> exp(-inf) = 0
    e = jnp.exp(t)                                 # EUP

    corr = jnp.where(m_prev == -jnp.inf, 0.0, jnp.exp(r * (m_prev - m_new)))
    l_sc[...] = l_sc[...] * corr + jnp.sum(e, axis=-1, keepdims=True)
    m_sc[...] = m_new

    @pl.when(k == pl.num_programs(1) - 1)
    def _finalize():
        inv_r = 1.0 / r
        o_ref[...] = (m_sc[...] + jnp.log(l_sc[...] * inv_s) * inv_r).astype(o_ref.dtype)


def lse_pool(x_nchw, r, *, tile_budget_bytes=4 << 20):
    """LSEPool forward. x_nchw: (B, C, W, H), any float dtype; r: learnable scalar.

    Returns (B, C, 1, 1) in the input dtype (matching the PyTorch module).
    """
    B, C, W, H = x_nchw.shape
    S = W * H
    R = B * C

    # Fold (B, C) into the row/sublane axis, spatial into the lane axis.
    # Contiguous reshape: no HBM copy; input kept in its native dtype.
    x2d = x_nchw.reshape(R, S)
    itemsize = jnp.dtype(x2d.dtype).itemsize

    TR, TS = _choose_tiles(R, S, itemsize, tile_budget_bytes)
    grid = (pl.cdiv(R, TR), pl.cdiv(S, TS))

    r_arr = jnp.asarray(r, jnp.float32).reshape(1)

    out = pl.pallas_call(
        functools.partial(_lse_pool_kernel, S=S, TS=TS, inv_s=1.0 / S),
        out_shape=jax.ShapeDtypeStruct((R, 1), x2d.dtype),
        grid=grid,
        in_specs=[
            pl.BlockSpec((TR, TS), lambda i, k: (i, k)),
            pl.BlockSpec(memory_space=pltpu.MemorySpace.SMEM),   # scalar r
        ],
        out_specs=pl.BlockSpec((TR, 1), lambda i, k: (i, 0)),
        scratch_shapes=[
            pltpu.VMEM((TR, 1), jnp.float32),      # running per-row max
            pltpu.VMEM((TR, 1), jnp.float32),      # running per-row sumexp
        ],
        compiler_params=pltpu.CompilerParams(
            dimension_semantics=("parallel", "arbitrary"),
            vmem_limit_bytes=32 << 20,
        ),
    )(x2d, r_arr)

    return out.reshape(B, C, 1, 1)


if __name__ == "__main__":
    B, C, W, H = 2, 4, 16, 16
    key = jax.random.PRNGKey(0)

    x = jax.random.normal(key, (B, C, W, H), jnp.float32)
    r = jnp.ones((1,), jnp.float32) * 10.0         # LSEPool learnable r (init = 10)

    out = lse_pool(x, r)
    jax.block_until_ready(out)
    assert out.shape == (B, C, 1, 1), out.shape

    # Pure-JAX reference of the PyTorch forward for a sanity check.
    s = W * H
    x_max = jnp.max(x, axis=(2, 3), keepdims=True)
    sumexp = jnp.sum(jnp.exp(r[0] * (x - x_max)), axis=(2, 3), keepdims=True) / s
    ref = x_max + jnp.log(sumexp) / r[0]
    assert jnp.allclose(out, ref, atol=1e-5, rtol=1e-5), float(jnp.max(jnp.abs(out - ref)))

    print("KERNEL_OK")
</pallas_src>

<mosaic_0001>
module attributes {stable_mosaic.version = 11 : i64} {
  func.func @_lse_pool_kernel(%arg0: i32, %arg1: i32, %arg2: memref<8x256xf32, #tpu.memory_space<vmem>>, %arg3: memref<1xf32, #tpu.memory_space<smem>>, %arg4: memref<8x1xf32, #tpu.memory_space<vmem>>, %arg5: memref<8x1xf32, #tpu.memory_space<vmem>>, %arg6: memref<8x1xf32, #tpu.memory_space<vmem>>) attributes {dimension_semantics = [#tpu.dimension_semantics<parallel>, #tpu.dimension_semantics<arbitrary>], iteration_bounds = array<i64: 1, 1>, scalar_prefetch = 0 : i64, scratch_operands = 2 : i64, tpu.core_type = #tpu.core_type<tc>, window_params = [{transform_indices = @transform_0, window_bounds = array<i64: 8, 256>}, {transform_indices = @transform_1, window_bounds = array<i64: 1>}, {transform_indices = @transform_2, window_bounds = array<i64: 8, 1>}]} {
    %c0_i32 = arith.constant 0 : i32
    %0 = arith.cmpi eq, %arg1, %c0_i32 : i32
    %1 = arith.extui %0 : i1 to i32
    %c0_i32_0 = arith.constant 0 : i32
    %2 = arith.cmpi ne, %1, %c0_i32_0 : i32
    scf.if %2 {
      %cst_16 = arith.constant 0xFF800000 : f32
      %32 = vector.broadcast %cst_16 : f32 to vector<8x1xf32>
      %c0_17 = arith.constant 0 : index
      %c0_18 = arith.constant 0 : index
      %33 = vector.load %arg5[%c0_17, %c0_18] : memref<8x1xf32, #tpu.memory_space<vmem>>, vector<8x1xf32>
      tpu.vector_store %arg5[%c0_17, %c0_18], %32 {strides = array<i32>} : memref<8x1xf32, #tpu.memory_space<vmem>>, vector<8x1xf32>,
      %cst_19 = arith.constant 0.000000e+00 : f32
      %34 = vector.broadcast %cst_19 : f32 to vector<8x1xf32>
      %c0_20 = arith.constant 0 : index
      %c0_21 = arith.constant 0 : index
      %35 = vector.load %arg6[%c0_20, %c0_21] : memref<8x1xf32, #tpu.memory_space<vmem>>, vector<8x1xf32>
      tpu.vector_store %arg6[%c0_20, %c0_21], %34 {strides = array<i32>} : memref<8x1xf32, #tpu.memory_space<vmem>>, vector<8x1xf32>,
    } else {
    }
    %c0 = arith.constant 0 : index
    %c0_1 = arith.constant 0 : index
    %3 = vector.load %arg2[%c0, %c0_1] : memref<8x256xf32, #tpu.memory_space<vmem>>, vector<8x256xf32>
    %c0_2 = arith.constant 0 : index
    %4 = memref.load %arg3[%c0_2] : memref<1xf32, #tpu.memory_space<smem>>
    %c0_3 = arith.constant 0 : index
    %c0_4 = arith.constant 0 : index
    %5 = vector.load %arg5[%c0_3, %c0_4] : memref<8x1xf32, #tpu.memory_space<vmem>>, vector<8x1xf32>
    %cst = arith.constant dense<0xFF800000> : vector<8xf32>
    %6 = vector.multi_reduction <maximumf>, %3, %cst [1] : vector<8x256xf32> to vector<8xf32>
    %7 = vector.shape_cast %6 : vector<8xf32> to vector<8x1xf32>
    %8 = arith.maximumf %5, %7 : vector<8x1xf32>
    %9 = vector.broadcast %8 : vector<8x1xf32> to vector<8x256xf32>
    %10 = arith.subf %3, %9 : vector<8x256xf32>
    %11 = vector.broadcast %4 : f32 to vector<8x256xf32>
    %12 = arith.mulf %11, %10 : vector<8x256xf32>
    %13 = math.exp %12 : vector<8x256xf32>
    %cst_5 = arith.constant 0xFF800000 : f32
    %14 = vector.broadcast %cst_5 : f32 to vector<8x1xf32>
    %15 = arith.cmpf oeq, %5, %14 : vector<8x1xf32>
    %16 = arith.subf %5, %8 : vector<8x1xf32>
    %17 = vector.broadcast %4 : f32 to vector<8x1xf32>
    %18 = arith.mulf %17, %16 : vector<8x1xf32>
    %19 = math.exp %18 : vector<8x1xf32>
    %cst_6 = arith.constant 0.000000e+00 : f32
    %20 = vector.broadcast %cst_6 : f32 to vector<8x1xf32>
    %21 = arith.select %15, %20, %19 : vector<8x1xi1>, vector<8x1xf32>
    %c0_7 = arith.constant 0 : index
    %c0_8 = arith.constant 0 : index
    %22 = vector.load %arg6[%c0_7, %c0_8] : memref<8x1xf32, #tpu.memory_space<vmem>>, vector<8x1xf32>
    %23 = arith.mulf %22, %21 : vector<8x1xf32>
    %cst_9 = arith.constant dense<0.000000e+00> : vector<8xf32>
    %24 = vector.multi_reduction <add>, %13, %cst_9 [1] : vector<8x256xf32> to vector<8xf32>
    %25 = vector.shape_cast %24 : vector<8xf32> to vector<8x1xf32>
    %26 = arith.addf %23, %25 : vector<8x1xf32>
    %c0_10 = arith.constant 0 : index
    %c0_11 = arith.constant 0 : index
    %27 = vector.load %arg6[%c0_10, %c0_11] : memref<8x1xf32, #tpu.memory_space<vmem>>, vector<8x1xf32>
    tpu.vector_store %arg6[%c0_10, %c0_11], %26 {strides = array<i32>} : memref<8x1xf32, #tpu.memory_space<vmem>>, vector<8x1xf32>,
    %c0_12 = arith.constant 0 : index
    %c0_13 = arith.constant 0 : index
    %28 = vector.load %arg5[%c0_12, %c0_13] : memref<8x1xf32, #tpu.memory_space<vmem>>, vector<8x1xf32>
    tpu.vector_store %arg5[%c0_12, %c0_13], %8 {strides = array<i32>} : memref<8x1xf32, #tpu.memory_space<vmem>>, vector<8x1xf32>,
    %c0_i32_14 = arith.constant 0 : i32
    %29 = arith.cmpi eq, %arg1, %c0_i32_14 : i32
    %30 = arith.extui %29 : i1 to i32
    %c0_i32_15 = arith.constant 0 : i32
    %31 = arith.cmpi ne, %30, %c0_i32_15 : i32
    scf.if %31 {
      %cst_16 = arith.constant 1.000000e+00 : f32
      %32 = arith.divf %cst_16, %4 : f32
      %c0_17 = arith.constant 0 : index
      %c0_18 = arith.constant 0 : index
      %33 = vector.load %arg5[%c0_17, %c0_18] : memref<8x1xf32, #tpu.memory_space<vmem>>, vector<8x1xf32>
      %c0_19 = arith.constant 0 : index
      %c0_20 = arith.constant 0 : index
      %34 = vector.load %arg6[%c0_19, %c0_20] : memref<8x1xf32, #tpu.memory_space<vmem>>, vector<8x1xf32>
      %cst_21 = arith.constant 3.906250e-03 : f32
      %35 = vector.broadcast %cst_21 : f32 to vector<8x1xf32>
      %36 = arith.mulf %34, %35 : vector<8x1xf32>
      %37 = math.log %36 : vector<8x1xf32>
      %38 = vector.broadcast %32 : f32 to vector<8x1xf32>
      %39 = arith.mulf %37, %38 : vector<8x1xf32>
      %40 = arith.addf %33, %39 : vector<8x1xf32>
      %c0_22 = arith.constant 0 : index
      %c0_23 = arith.constant 0 : index
      %41 = vector.load %arg4[%c0_22, %c0_23] : memref<8x1xf32, #tpu.memory_space<vmem>>, vector<8x1xf32>
      tpu.vector_store %arg4[%c0_22, %c0_23], %40 {strides = array<i32>} : memref<8x1xf32, #tpu.memory_space<vmem>>, vector<8x1xf32>,
    } else {
    }
    return
  }
  func.func @transform_0(%arg0: i32, %arg1: i32) -> (i32, i32) {
    %c0_i32 = arith.constant 0 : i32
    return %arg0, %arg1 : i32, i32
  }
  func.func @transform_1(%arg0: i32, %arg1: i32) -> i32 {
    %c0_i32 = arith.constant 0 : i32
    %c0_i32_0 = arith.constant 0 : i32
    return %c0_i32 : i32
  }
  func.func @transform_2(%arg0: i32, %arg1: i32) -> (i32, i32) {
    %c0_i32 = arith.constant 0 : i32
    %c0_i32_0 = arith.constant 0 : i32
    return %arg0, %c0_i32 : i32, i32
  }
}

</mosaic_0001>

<bundles_post_ra>
// kernel: tpu_custom_call.1
= control target key start
LH: loop header
LB: loop body
LE: loop exit
PB: predicated region body
PF: predicated region fallthrough
CT: control target
= control target key end

     0   :  { %8 = vsyncpa [#allocation6], 0  ;;  %s129_s9 = smov [#allocation5]   ;;  %s171_s0 = inlined_call_operand.hbm [shape: f32[8,256], index: 0, kind: input, shape index: {}]   ;;  %s172_s1 = inlined_call_operand.<no memory space> [shape: f32[1], index: 1, kind: input, shape index: {}]   ;;  %s173_s2 = inlined_call_operand.vmem [shape: f32[8,1], index: 2, kind: output, shape index: {}]  }
   0x1   :  { %s15_s10 = sshll.u32 %s129_s9, 4  ;;  %s105_s13 = scalar_lea.hbm %s171_s0, 256  ;;  %s16_s10 = int_to_ptr.vmem [resolvable:$true] %s15_s10 }
   0x2   :  { %p106_p0 = scmp.ne.s32.totalorder %s171_s0, %s105_s13  ;;  %p109_p1 = scmp.lt.u32.totalorder %s105_s13, %s171_s0 }
   0x4   :  { %p111_p2 = pnand %p109_p1, %p106_p0 }
   0x6   :  { %114 = shalt.err (!%p111_p2)
}
   0x7   :  { %s115_s18 = scalar_lea.vmem %s16_s10, 256  ;;  %p120_p4 = scmp.lt.s32.totalorder %s16_s10, %s16_s10 }
   0x8   :  { %p116_p3 = scmp.ne.s32.totalorder %s16_s10, %s115_s18  ;;  %p121_p5 = scmp.lt.s32.totalorder %s115_s18, %s115_s18 }
   0xa   :  { %p122_p6 = por %p121_p5, %p120_p4 }
   0xc   :  { %p123_p7 = pnand %p122_p6, %p116_p3 }
   0xe   :  { %126 = shalt.err (!%p123_p7)
}
   0xf   :  { %18 = dma.hbm_to_vmem [thread:$0]  %s171_s0, 256, %s16_s10, [#allocation6]  }
  0x10   :  { %127 = dma.done.wait [#allocation6], 256  }
  0x11   :  { %128 = vsyncadd [#allocation6], 4294967040  ;;  %vm28_vm0 = vcmask 7168   ;;  %v130_v0 = vmov -inf   ;;  %v31_v1 = vld [vmem:[#allocation5] sm:$0xff]  ;;  %v32_v2 = vld [vmem:[#allocation5 + $0x8] sm:$0xff]  ;;  %v46_v9 = vstv %s172_s1 }
  0x12   :  { %29 = vst.msk [vmem:[#allocation2] sm:$0xff] %vm28_vm0, %v130_v0  ;;  %v35_v3 = vmax.f32 %v31_v1, %v32_v2  ;;  %v131_v4 = vmov 0   ;;  %v132_v5 = vmov 0.0   ;;  %95 = vrcp.f32 %v46_v9 }
  0x13   :  { %94 = vset.pattern.permute.xlu0 %v131_v4  ;;  %30 = vst.msk [vmem:[#allocation3] sm:$0xff] %vm28_vm0, %v132_v5 }
  0x14   :  { %36 = vmax.xlane.f32.xlu0 %v35_v3 }
  0x19   :  { %v34_v6 = vld [vmem:[#allocation2] sm:$0xff] }
  0x1a   :  { %vm53_vm1 = vcmp.eq.f32.partialorder %v34_v6, -inf  ;;  %v59_v25 = vld [vmem:[#allocation3] sm:$0xff] }
  0x1c   :  { %v96_v10 = vpop.eup %95 }
  0x1d   :  { %88 = vpush %v96_v10 }
  0x4e   :  { %s89_s1 = spop %88 }
  0x4f   :  { %v79_v33 = vstv %s89_s1 }
  0xa1   :  { %v37_v7 = vpop.xlane.xlu0 %36 }
  0xa2   :  { %v38_v8 = vmax.f32 %v34_v6, %v37_v7 }
  0xa4   :  { %67 = vst.msk [vmem:[#allocation2] sm:$0xff] %vm28_vm0, %v38_v8  ;;  %41 = vperm.xlu0 %94, %v38_v8   ;;  %v54_v21 = vsub.f32 %v34_v6, %v38_v8 }
  0xa6   :  { %v55_v22 = vmul.f32 %v54_v21, %v46_v9 }
  0xa8   :  { %v56_v23 = vmul.f32 1.442695, %v55_v22 }
  0xab   :  { %v74_v36 = vld [vmem:[#allocation2] sm:$0xff] }
 0x123   :  { %v42_v11 = vpop.permute.xlu0 %41 }
 0x124   :  { %v44_v12 = vsub.f32 %v31_v1, %v42_v11  ;;  %v45_v13 = vsub.f32 %v32_v2, %v42_v11 }
 0x126   :  { %v47_v14 = vmul.f32 %v46_v9, %v44_v12  ;;  %v48_v15 = vmul.f32 %v46_v9, %v45_v13 }
 0x128   :  { %v49_v16 = vmul.f32 1.442695, %v47_v14  ;;  %v51_v17 = vmul.f32 1.442695, %v48_v15 }
 0x12a   :  { %97 = vpow2.f32 %v49_v16 }
 0x12b   :  { %99 = vpow2.f32 %v51_v17 }
 0x12c   :  { %101 = vpow2.f32 %v56_v23 }
 0x134   :  { %v98_v18 = vpop.eup %97 }
 0x135   :  { %v100_v19 = vpop.eup %99 }
 0x136   :  { %v61_v20 = vadd.f32 %v100_v19, %v98_v18  ;;  %v102_v24 = vpop.eup %101 }
 0x137   :  { %v58_v26 = vsel %vm53_vm1, 0.0, %v102_v24 }
 0x138   :  { %62 = vadd.xlane.f32.xlu1 %v61_v20  ;;  %v60_v27 = vmul.f32 %v59_v25, %v58_v26 }
 0x1c5   :  { %v63_v28 = vpop.xlane.xlu1 %62 }
 0x1c6   :  { %v64_v29 = vadd.f32 %v63_v28, %v60_v27 }
 0x1c8   :  { %66 = vst.msk [vmem:[#allocation3] sm:$0xff] %vm28_vm0, %v64_v29 }
 0x1cf   :  { %v75_v30 = vld [vmem:[#allocation3] sm:$0xff] }
 0x1d0   :  { %v76_v31 = vmul.f32 0.00390625, %v75_v30 }
 0x1d2   :  { %103 = vlog2.f32 %v76_v31 }
 0x1dc   :  { %v104_v32 = vpop.eup %103 }
 0x1dd   :  { %v78_v34 = vmul.f32 0.6931472, %v104_v32 }
 0x1df   :  { %v80_v35 = vmul.f32 %v79_v33, %v78_v34 }
 0x1e1   :  { %v81_v37 = vadd.f32 %v80_v35, %v74_v36 }
 0x1e3   :  { %82 = vst.msk [vmem:[%s173_s2] sm:$0xff] %vm28_vm0, %v81_v37 }
 0x1e4   :  { %87 = vsyncpa [#allocation6], 1 }

</bundles_post_ra>
